<compile_context>
chip_gen: v7x
topology: tpu7x:2x2x1
jax: 0.10.0
libtpu: 0.0.40
codegen_flags: <defaults>
</compile_context>

<pallas_src>
import math
import functools

import numpy as np
import jax
import jax.numpy as jnp
from jax.experimental import pallas as pl
from jax.experimental.pallas import tpu as pltpu


def _round_up(n, m):
    return ((n + m - 1) // m) * m


# ---------------------------------------------------------------------------
# Pallas kernel: per-sample NLL given precomputed A^{-T} (one MXU matmul +
# row-wise sum of squares + affine finish).
# ---------------------------------------------------------------------------
def _nll_kernel(x_ref, mu_ref, ainvt_ref, const_ref, out_ref):
    # x_ref:     (TB, D)   batch tile of flattened inputs (f32, feature dim unpadded)
    # mu_ref:    (1,  D)   mean (VMEM-resident across the grid)
    # ainvt_ref: (D,  Dp)  A^{-T}, zero-padded columns (resident; f32 or bf16)
    # const_ref: (1, 1)    sum(log_diagonal) + 0.5*D*log(2*pi)   (SMEM scalar)
    # out_ref:   (TB, 1)   per-sample negative log-likelihood (f32)
    diff = x_ref[...] - mu_ref[...]                                  # (TB, D) f32
    a = ainvt_ref[...]
    # MXU matmul; K = D (unpadded, fine for the MXU), N = Dp (zero columns add 0).
    w = jnp.dot(diff.astype(a.dtype), a,
                preferred_element_type=jnp.float32)                  # (TB, Dp) f32
    quad = jnp.sum(w * w, axis=-1, keepdims=True)                    # Mahalanobis term
    # TODO(synk): lane-dense (1, TB) output (review item) needs a (TB,1)->(1,TB)
    # relayout (XLU transpose); kept the proven lane-1 store since the output is
    # tiny relative to the x stream and large batch tiles amortize the masked vst.
    out_ref[...] = 0.5 * quad + const_ref[0, 0]


def _nll_pallas(x2d, mu2d, ainvt, const, tb):
    Bp, D = x2d.shape
    Dp = ainvt.shape[1]
    itemsize = jnp.dtype(ainvt.dtype).itemsize
    grid = (Bp // tb,)

    flops = 2 * Bp * D * Dp + 3 * Bp * Dp
    bytes_accessed = 4 * Bp * D + itemsize * D * Dp + 4 * D + 4 * Bp

    # VMEM budget: double-buffered x tiles + resident (double-buffered) mu/A^{-T}
    # + out tiles + the w intermediate.  Explicit limit so big tiles are not
    # rejected by v5e's 16 MiB default scoped limit.
    vmem_bytes = (2 * tb * D * 4 + 2 * D * Dp * itemsize + 2 * D * 4
                  + 2 * tb * 4 + tb * Dp * 4)
    vmem_limit = int(min(max(2 * vmem_bytes, 32 << 20), 100 << 20))

    # TODO(synk): for D >= ~2k add an inner "arbitrary" grid axis over Dp-column
    # tiles of ainvt (+ (tb, 1) f32 VMEM accumulator finalized with pl.when) so
    # ainvt need not be fully VMEM-resident on v7x (64 MiB/TC), and single-buffer
    # the grid-invariant mu/ainvt operands (pl.Buffered(1)) once verified.
    return pl.pallas_call(
        _nll_kernel,
        out_shape=jax.ShapeDtypeStruct((Bp, 1), jnp.float32),
        grid=grid,
        in_specs=[
            pl.BlockSpec((tb, D), lambda i: (i, 0)),             # x: tiled over batch
            pl.BlockSpec((1, D), lambda i: (0, 0)),              # mu: resident
            pl.BlockSpec((D, Dp), lambda i: (0, 0)),             # A^{-T}: resident
            pl.BlockSpec(memory_space=pltpu.MemorySpace.SMEM),   # scalar const
        ],
        out_specs=pl.BlockSpec((tb, 1), lambda i: (i, 0)),
        compiler_params=pltpu.CompilerParams(
            dimension_semantics=("parallel",),
            vmem_limit_bytes=vmem_limit),
        cost_estimate=pl.CostEstimate(
            flops=int(flops), transcendentals=0,
            bytes_accessed=int(bytes_accessed)),
    )(x2d, mu2d, ainvt, const)


@functools.partial(jax.jit, static_argnames=("tb",))
def _nll_fast_path(x2d, mu2d, ainvt_pad, const, tb):
    """Jitted fully-observed branch: pad batch only if needed, run kernel, slice."""
    B, _ = x2d.shape
    Bp = _round_up(max(B, tb), tb)
    # No feature-dim padding of x (dominant HBM stream); batch rows are padded
    # only when B is not a tile multiple (caller clamps tb <= round_up(B, 8)).
    x_in = x2d if Bp == B else jnp.pad(x2d, ((0, Bp - B), (0, 0)))
    nll = _nll_pallas(x_in, mu2d, ainvt_pad, const, tb)
    return nll[:B, 0]


class GaussianPallas:
    """JAX/Pallas port of the PyTorch `Gaussian` module (cov=None branch)."""

    def __init__(self, dim, key, diag_scale=0.2, tri_scale=None):
        self.dim = int(dim)
        k_mu, k_diag, k_tri = jax.random.split(key, 3)
        if tri_scale is None:
            # NOTE: the torch module inits these with N(0,1); for dim >> 1 that
            # makes cov exponentially ill-conditioned and any f32 NLL meaningless.
            # The scaled init keeps the self-check numerically meaningful; the
            # forward math is identical for any parameter values.
            tri_scale = 0.3 / math.sqrt(self.dim)
        self.mu = jax.random.normal(k_mu, (self.dim,), dtype=jnp.float32)
        self.log_diagonal = diag_scale * jax.random.normal(
            k_diag, (self.dim,), dtype=jnp.float32)
        n_tril = self.dim * (self.dim - 1) // 2
        self.lower_tri = tri_scale * jax.random.normal(
            k_tri, (n_tril,), dtype=jnp.float32)
        self.tril_rows, self.tril_cols = jnp.tril_indices(self.dim, k=-1)
        # Prepared-operand cache keyed on parameter array identities (+ dtype):
        # assigning new parameter arrays automatically invalidates it.
        self._cache = {}

    def invalidate_cache(self):
        self._cache = {}

    def _factor(self):
        # A = strict-lower(lower_tri) + diag(exp(log_diagonal)) ; cov = A @ A.T
        A = jnp.zeros((self.dim, self.dim), dtype=jnp.float32)
        A = A.at[self.tril_rows, self.tril_cols].set(self.lower_tri)
        A = A + jnp.diag(jnp.exp(self.log_diagonal))
        return A

    def _prepared(self, matmul_dtype=jnp.float32):
        key = (id(self.mu), id(self.log_diagonal), id(self.lower_tri),
               jnp.dtype(matmul_dtype).name)
        if key not in self._cache:
            D = self.dim
            Dp = _round_up(max(D, 128), 128)   # lane-align only the matmul N dim
            A = self._factor()
            # NOTE: explicit triangular inverse assumes A is reasonably
            # conditioned (torch's MVN uses a per-call triangular solve).
            ainv = jax.scipy.linalg.solve_triangular(
                A, jnp.eye(D, dtype=jnp.float32), lower=True)
            ainvt_pad = (jnp.zeros((D, Dp), jnp.float32)
                         .at[:, :D].set(ainv.T).astype(matmul_dtype))
            mu2d = self.mu.reshape(1, D).astype(jnp.float32)
            const = jnp.reshape(
                jnp.sum(self.log_diagonal) + 0.5 * D * math.log(2.0 * math.pi),
                (1, 1)).astype(jnp.float32)
            self._cache[key] = (mu2d, ainvt_pad, const)
        return self._cache[key]

    def forward(self, x, mask=None, *, fully_observed=None, tb=None,
                matmul_dtype=jnp.float32):
        B = x.shape[0]
        x2d = x.reshape(B, -1).astype(jnp.float32)
        if x2d.shape[1] != self.dim:
            raise ValueError("flattened input dim does not match model dim")

        # Branch selection without a per-call device->host sync: prefer the
        # static `fully_observed` flag; only fall back to inspecting `mask`.
        if fully_observed is None:
            if mask is None:
                fully_observed = True
            else:
                fully_observed = bool(
                    np.asarray(jax.device_get(mask)).astype(bool).all())
        if not fully_observed:
            # TODO(synk): partially-observed branch (per-sample boolean gather +
            # variable-size Cholesky of cov[mask][:, mask]) has no static-shape
            # Pallas equivalent; not implemented.
            raise NotImplementedError(
                "masked (partially observed) branch not implemented")

        mu2d, ainvt_pad, const = self._prepared(matmul_dtype)

        D = self.dim
        if tb is None:
            # ~1 MiB x block per grid step, multiple of 256 rows for MXU M eff.
            tb = max(256, _round_up((1 << 20) // (4 * max(D, 1)), 256))
        tb = max(8, _round_up(int(tb), 8))       # f32 sublane alignment
        tb = min(tb, _round_up(B, 8))            # never inflate work for small B
        nll = _nll_fast_path(x2d, mu2d, ainvt_pad, const, int(tb))
        return nll, None


# ---------------------------------------------------------------------------
# References (plain JAX)
# ---------------------------------------------------------------------------
def _reference_nll_chol(x2d, mu, A, log_diag):
    # Mirrors torch.distributions.MultivariateNormal internals: triangular solve
    # against the Cholesky factor (which is A itself, by construction).
    D = mu.shape[0]
    diff = x2d - mu[None, :]
    z = jax.scipy.linalg.solve_triangular(A, diff.T, lower=True).T
    return (0.5 * jnp.sum(z * z, axis=-1)
            + jnp.sum(log_diag) + 0.5 * D * math.log(2.0 * math.pi))


def _reference_nll_cov(x2d, mu, A):
    # Definition-level cross-check through the explicit covariance.
    cov = A @ A.T
    D = mu.shape[0]
    diff = x2d - mu[None, :]
    sol = jnp.linalg.solve(cov, diff.T).T
    quad = jnp.sum(diff * sol, axis=-1)
    _, logdet = jnp.linalg.slogdet(cov)
    return 0.5 * (quad + logdet + D * math.log(2.0 * math.pi))


if __name__ == "__main__":
    key = jax.random.PRNGKey(0)
    k_param, k_x = jax.random.split(key)

    B, H, W = 32, 8, 8          # x: (32, 8, 8) -> flattened dim D = 64
    D = H * W

    model = GaussianPallas(dim=D, key=k_param)

    x = jax.random.normal(k_x, (B, H, W), dtype=jnp.float32)
    mask = jnp.ones((B, H, W), dtype=jnp.bool_)   # fully observed -> fast path

    # Default tile policy (no feature-dim padding of x, no host mask sync).
    nll, aux = model.forward(x, mask, fully_observed=True)
    nll = jax.block_until_ready(nll)
    assert nll.shape == (B,)
    assert aux is None

    A = model._factor()
    x2d = x.reshape(B, -1)
    ref = _reference_nll_chol(x2d, model.mu, A, model.log_diagonal)
    assert bool(jnp.allclose(nll, ref, rtol=1e-3, atol=1e-3)), (nll, ref)

    ref_cov = _reference_nll_cov(x2d, model.mu, A)
    assert bool(jnp.allclose(nll, ref_cov, rtol=1e-2, atol=1e-2)), (nll, ref_cov)

    # Small tile purely to exercise a multi-step batch grid (index-map check);
    # production calls use the default ~1 MiB tiles.
    nll_multi, _ = model.forward(x, fully_observed=True, tb=16)
    nll_multi = jax.block_until_ready(nll_multi)
    assert bool(jnp.allclose(nll_multi, ref, rtol=1e-3, atol=1e-3))

    # Optional bf16 MXU path (review item, largest win on v5e); f32 accumulate.
    nll_bf16, _ = model.forward(x, fully_observed=True,
                                matmul_dtype=jnp.bfloat16)
    nll_bf16 = jax.block_until_ready(nll_bf16)
    assert bool(jnp.allclose(nll_bf16, ref, rtol=5e-2, atol=0.5)), (nll_bf16, ref)

    print("KERNEL_OK")
</pallas_src>

<mosaic_0001>
module attributes {stable_mosaic.version = 11 : i64} {
  func.func @_nll_kernel(%arg0: i32, %arg1: memref<32x64xf32, #tpu.memory_space<vmem>>, %arg2: memref<1x64xf32, #tpu.memory_space<vmem>>, %arg3: memref<64x128xf32, #tpu.memory_space<vmem>>, %arg4: memref<1x1xf32, #tpu.memory_space<smem>>, %arg5: memref<32x1xf32, #tpu.memory_space<vmem>>) attributes {dimension_semantics = [#tpu.dimension_semantics<parallel>], iteration_bounds = array<i64: 1>, scalar_prefetch = 0 : i64, scratch_operands = 0 : i64, tpu.core_type = #tpu.core_type<tc>, window_params = [{transform_indices = @transform_0, window_bounds = array<i64: 32, 64>}, {pipeline_mode = #tpu.pipeline_mode<synchronous>, transform_indices = @transform_1, window_bounds = array<i64: 1, 64>}, {pipeline_mode = #tpu.pipeline_mode<synchronous>, transform_indices = @transform_2, window_bounds = array<i64: 64, 128>}, {transform_indices = @transform_3, window_bounds = array<i64: 1, 1>}, {transform_indices = @transform_4, window_bounds = array<i64: 32, 1>}]} {
    %c0 = arith.constant 0 : index
    %c0_0 = arith.constant 0 : index
    %0 = vector.load %arg1[%c0, %c0_0] : memref<32x64xf32, #tpu.memory_space<vmem>>, vector<32x64xf32>
    %c0_1 = arith.constant 0 : index
    %c0_2 = arith.constant 0 : index
    %1 = vector.load %arg2[%c0_1, %c0_2] : memref<1x64xf32, #tpu.memory_space<vmem>>, vector<1x64xf32>
    %2 = vector.broadcast %1 : vector<1x64xf32> to vector<32x64xf32>
    %3 = arith.subf %0, %2 : vector<32x64xf32>
    %c0_3 = arith.constant 0 : index
    %c0_4 = arith.constant 0 : index
    %4 = vector.load %arg3[%c0_3, %c0_4] : memref<64x128xf32, #tpu.memory_space<vmem>>, vector<64x128xf32>
    %cst = arith.constant dense<0.000000e+00> : vector<32x128xf32>
    %5 = tpu.matmul %3, %4, %cst {dimension_numbers = #tpu.dot_dimension_numbers<[1], [0], [0], [1], [0, 0, 1, 1], [], []>} : vector<32x64xf32>, vector<64x128xf32>, vector<32x128xf32> -> vector<32x128xf32>
    %6 = arith.mulf %5, %5 : vector<32x128xf32>
    %cst_5 = arith.constant dense<0.000000e+00> : vector<32xf32>
    %7 = vector.multi_reduction <add>, %6, %cst_5 [1] : vector<32x128xf32> to vector<32xf32>
    %8 = vector.shape_cast %7 : vector<32xf32> to vector<32x1xf32>
    %cst_6 = arith.constant 5.000000e-01 : f32
    %9 = vector.broadcast %cst_6 : f32 to vector<32x1xf32>
    %10 = arith.mulf %9, %8 : vector<32x1xf32>
    %c0_7 = arith.constant 0 : index
    %c0_8 = arith.constant 0 : index
    %11 = memref.load %arg4[%c0_7, %c0_8] : memref<1x1xf32, #tpu.memory_space<smem>>
    %12 = vector.broadcast %11 : f32 to vector<32x1xf32>
    %13 = arith.addf %10, %12 : vector<32x1xf32>
    %c0_9 = arith.constant 0 : index
    %c0_10 = arith.constant 0 : index
    %14 = vector.load %arg5[%c0_9, %c0_10] : memref<32x1xf32, #tpu.memory_space<vmem>>, vector<32x1xf32>
    tpu.vector_store %arg5[%c0_9, %c0_10], %13 {strides = array<i32>} : memref<32x1xf32, #tpu.memory_space<vmem>>, vector<32x1xf32>,
    return
  }
  func.func @transform_0(%arg0: i32) -> (i32, i32) {
    %c0_i32 = arith.constant 0 : i32
    %c0_i32_0 = arith.constant 0 : i32
    return %arg0, %c0_i32 : i32, i32
  }
  func.func @transform_1(%arg0: i32) -> (i32, i32) {
    %c0_i32 = arith.constant 0 : i32
    %c0_i32_0 = arith.constant 0 : i32
    %c0_i32_1 = arith.constant 0 : i32
    return %c0_i32, %c0_i32_0 : i32, i32
  }
  func.func @transform_2(%arg0: i32) -> (i32, i32) {
    %c0_i32 = arith.constant 0 : i32
    %c0_i32_0 = arith.constant 0 : i32
    %c0_i32_1 = arith.constant 0 : i32
    return %c0_i32, %c0_i32_0 : i32, i32
  }
  func.func @transform_3(%arg0: i32) -> (i32, i32) {
    %c0_i32 = arith.constant 0 : i32
    %c0_i32_0 = arith.constant 0 : i32
    %c0_i32_1 = arith.constant 0 : i32
    return %c0_i32, %c0_i32_0 : i32, i32
  }
  func.func @transform_4(%arg0: i32) -> (i32, i32) {
    %c0_i32 = arith.constant 0 : i32
    %c0_i32_0 = arith.constant 0 : i32
    return %arg0, %c0_i32 : i32, i32
  }
}

</mosaic_0001>

<bundles_post_ra>
// kernel: _nll_fast_path.1
= control target key start
LH: loop header
LB: loop body
LE: loop exit
PB: predicated region body
PF: predicated region fallthrough
CT: control target
= control target key end

     0   :  { %10 = vsyncpa [#allocation4], 0  ;;  %s390_s0 = inlined_call_operand.hbm [shape: f32[32,64], index: 0, kind: input, shape index: {}]   ;;  %s391_s1 = inlined_call_operand.vmem [shape: f32[1,64], index: 1, kind: input, shape index: {}]   ;;  %s392_s2 = inlined_call_operand.hbm [shape: f32[64,128], index: 2, kind: input, shape index: {}]   ;;  %s393_s3 = inlined_call_operand.<no memory space> [shape: f32[1,1], index: 3, kind: input, shape index: {}]   ;;  %s394_s4 = inlined_call_operand.vmem [shape: f32[32,1], index: 4, kind: output, shape index: {}]  }
   0x1   :  { %11 = vsyncpa [#allocation6], 0  ;;  %s315_s15 = smov [#allocation3]   ;;  %s267_s19 = scalar_lea.hbm %s390_s0, 512 }
   0x2   :  { %s17_s16 = sshll.u32 %s315_s15, 4  ;;  %p268_p0 = scmp.ne.s32.totalorder %s390_s0, %s267_s19  ;;  %s18_s16 = int_to_ptr.vmem [resolvable:$true] %s17_s16 }
   0x3   :  { %p271_p1 = scmp.lt.u32.totalorder %s267_s19, %s390_s0 }
   0x5   :  { %p273_p2 = pnand %p271_p1, %p268_p0 }
   0x7   :  { %276 = shalt.err (!%p273_p2)
}
   0x8   :  { %s277_s24 = scalar_lea.vmem %s18_s16, 512  ;;  %p282_p4 = scmp.lt.s32.totalorder %s18_s16, %s18_s16 }
   0x9   :  { %p278_p3 = scmp.ne.s32.totalorder %s18_s16, %s277_s24  ;;  %p283_p5 = scmp.lt.s32.totalorder %s277_s24, %s277_s24 }
   0xb   :  { %p284_p6 = por %p283_p5, %p282_p4 }
   0xd   :  { %p285_p7 = pnand %p284_p6, %p278_p3 }
   0xf   :  { %288 = shalt.err (!%p285_p7)
}
  0x10   :  { %s316_s25 = smov 128   ;;  %s317_s26 = smov 8  }
  0x11   :  { %23 = dma.hbm_to_vmem [thread:$0]  %s390_s0, 512, %s18_s16, [#allocation4], %s316_s25, %s316_s25, %s317_s26  }
  0x12   :  { %s318_s29 = smov [#allocation5]   ;;  %s289_s7 = scalar_lea.hbm %s392_s2, 1024 }
  0x13   :  { %s31_s30 = sshll.u32 %s318_s29, 4  ;;  %p290_p8 = scmp.ne.s32.totalorder %s392_s2, %s289_s7  ;;  %s32_s30 = int_to_ptr.vmem [resolvable:$true] %s31_s30 }
  0x14   :  { %p293_p9 = scmp.lt.u32.totalorder %s289_s7, %s392_s2 }
  0x16   :  { %p295_p10 = pnand %p293_p9, %p290_p8 }
  0x18   :  { %298 = shalt.err (!%p295_p10)
}
  0x19   :  { %s299_s12 = scalar_lea.vmem %s32_s30, 1024  ;;  %p304_p12 = scmp.lt.s32.totalorder %s32_s30, %s32_s30 }
  0x1a   :  { %p300_p11 = scmp.ne.s32.totalorder %s32_s30, %s299_s12  ;;  %p305_p13 = scmp.lt.s32.totalorder %s299_s12, %s299_s12 }
  0x1c   :  { %p306_p0 = por %p305_p13, %p304_p12 }
  0x1e   :  { %p307_p1 = pnand %p306_p0, %p300_p11 }
  0x20   :  { %310 = shalt.err (!%p307_p1)
}
  0x21   :  { %37 = dma.hbm_to_vmem [thread:$0]  %s392_s2, 1024, %s32_s30, [#allocation6], %s316_s25, %s316_s25, %s317_s26  }
  0x22   :  { %311 = dma.done.wait [#allocation4], 512  }
  0x23   :  { %312 = vsyncadd [#allocation4], 4294966784 }
  0x24   :  { %313 = dma.done.wait [#allocation6], 1024  }
  0x25   :  { %314 = vsyncadd [#allocation6], 4294966272  ;;  %v61_v0 = vld [vmem:[#allocation5] sm:$0xff]  ;;  %v62_v1 = vld [vmem:[#allocation5 + $0x8] sm:$0xff]  ;;  %vm69_vm0 = vcmask 523264   ;;  %v184_v29 = vstv %s393_s3  ;;  %vm189_vm1 = vcmask 7168  }
  0x26   :  { %v63_v2 = vld [vmem:[#allocation5 + $0x10] sm:$0xff]  ;;  %v239_v3 = vpack.c.bf16 %v62_v1, %v61_v0  ;;  %v64_v4 = vld [vmem:[#allocation5 + $0x18] sm:$0xff]  ;;  %v65_v6 = vld [vmem:[#allocation5 + $0x20] sm:$0xff] }
  0x27   :  { %v243_v5 = vpack.c.bf16 %v64_v4, %v63_v2  ;;  %v66_v7 = vld [vmem:[#allocation5 + $0x28] sm:$0xff]  ;;  %v46_v8 = vld [vmem:[#allocation3] sm:$0xff]  ;;  %v48_v10 = vld [vmem:[#allocation3 + $0x10] sm:$0xff] }
  0x28   :  { %240 = vmatprep.subr.bf16.mxu0 %v239_v3  ;;  %255 = vmatprep.subr.bf16.mxu1 %v239_v3  ;;  %v200_v9 = vld [vmem:[%s391_s1] ss:$0 sm:$0xff]  ;;  %v247_v13 = vpack.c.bf16 %v66_v7, %v65_v6  ;;  %v67_v14 = vld [vmem:[#allocation5 + $0x30] sm:$0xff]  ;;  %v68_v15 = vld [vmem:[#allocation5 + $0x38] sm:$0xff] }
  0x29   :  { %242 = vmatpush3.bf16.msra.mxu0 %v239_v3  ;;  %259 = vmatpush3.bf16.msra.mxu1 %v239_v3  ;;  %v57_v11 = vsub.f32 %v46_v8, %v200_v9  ;;  %v59_v12 = vsub.f32 %v48_v10, %v200_v9  ;;  %v251_v16 = vpack.c.bf16 %v68_v15, %v67_v14  ;;  %v47_v17 = vld [vmem:[#allocation3 + $0x8] sm:$0xff]  ;;  %v49_v18 = vld [vmem:[#allocation3 + $0x18] sm:$0xff] }
  0x2a   :  { %244 = vmatprep.subr.bf16.mxu0 %v243_v5  ;;  %256 = vmatprep.subr.bf16.mxu1 %v243_v5  ;;  %v58_v19 = vsub.f32 %v47_v17, %v200_v9  ;;  %v60_v20 = vsub.f32 %v49_v18, %v200_v9 }
  0x2b   :  { %233 = vmatprep.mubr.msk.f32.mxu0 %vm69_vm0, %v57_v11  ;;  %236 = vmatprep.mubr.msk.f32.mxu1 %vm69_vm0, %v59_v12 }
  0x2d   :  { %246 = vmatpush3.bf16.msra.mxu0 %v243_v5  ;;  %260 = vmatpush3.bf16.msra.mxu1 %v243_v5 }
  0x2e   :  { %248 = vmatprep.subr.bf16.mxu0 %v247_v13  ;;  %257 = vmatprep.subr.bf16.mxu1 %v247_v13 }
  0x31   :  { %250 = vmatpush3.bf16.msra.mxu0 %v247_v13  ;;  %261 = vmatpush3.bf16.msra.mxu1 %v247_v13 }
  0x32   :  { %252 = vmatprep.subr.bf16.mxu0 %v251_v16  ;;  %258 = vmatprep.subr.bf16.mxu1 %v251_v16 }
  0x35   :  { %254 = vmatpush3.bf16.msra.mxu0 %v251_v16  ;;  %262 = vmatpush3.bf16.msra.mxu1 %v251_v16 }
  0x38   :  { %234 = vmatmul.mubr.msk.f32.vlgmr.msra.gmra.mrb[0].mxu0 %vm69_vm0, %v58_v19  ;;  %237 = vmatmul.mubr.msk.f32.vlgmr.msra.gmra.mrb[0].mxu1 %vm69_vm0, %v60_v20 }
 0x10b   :  { %v235_v21 = vpop.f32.mrb[0].mxu0  ;;  %v238_v22 = vpop.f32.mrb[0].mxu1 }
 0x10c   :  { %v148_v23 = vpop.f32.mrb[1].mxu0  ;;  %v158_v24 = vpop.f32.mrb[1].mxu1  ;;  %v168_v27 = vmul.f32 %v235_v21, %v235_v21  ;;  %v170_v28 = vmul.f32 %v238_v22, %v238_v22 }
 0x10d   :  { %v167_v25 = vmul.f32 %v148_v23, %v148_v23  ;;  %v169_v26 = vmul.f32 %v158_v24, %v158_v24 }
 0x10f   :  { %175 = vadd.xlane.f32.xlu1 %v169_v26  ;;  %171 = vadd.xlane.f32.xlu0 %v167_v25 }
 0x113   :  { %177 = vadd.xlane.f32.xlu1 %v170_v28  ;;  %173 = vadd.xlane.f32.xlu0 %v168_v27 }
 0x19c   :  { %v176_v30 = vpop.xlane.xlu1 %175  ;;  %v172_v31 = vpop.xlane.xlu0 %171 }
 0x19d   :  { %v181_v32 = vmul.f32 0.5, %v176_v30  ;;  %v179_v33 = vmul.f32 0.5, %v172_v31 }
 0x19f   :  { %v187_v34 = vadd.f32 %v184_v29, %v181_v32  ;;  %v185_v35 = vadd.f32 %v184_v29, %v179_v33 }
 0x1a0   :  { %v178_v36 = vpop.xlane.xlu1 %177  ;;  %v174_v37 = vpop.xlane.xlu0 %173 }
 0x1a1   :  { %192 = vst.msk [vmem:[%s394_s4 + $0x10] sm:$0xff] %vm189_vm1, %v187_v34  ;;  %190 = vst.msk [vmem:[%s394_s4] sm:$0xff] %vm189_vm1, %v185_v35  ;;  %v182_v38 = vmul.f32 0.5, %v178_v36  ;;  %v180_v39 = vmul.f32 0.5, %v174_v37 }
 0x1a3   :  { %v188_v40 = vadd.f32 %v184_v29, %v182_v38  ;;  %v186_v41 = vadd.f32 %v184_v29, %v180_v39 }
 0x1a5   :  { %193 = vst.msk [vmem:[%s394_s4 + $0x18] sm:$0xff] %vm189_vm1, %v188_v40  ;;  %191 = vst.msk [vmem:[%s394_s4 + $0x8] sm:$0xff] %vm189_vm1, %v186_v41 }
 0x1a6   :  { %198 = vsyncpa [#allocation4], 1 }
 0x1a7   :  { %199 = vsyncpa [#allocation6], 1 }

</bundles_post_ra>
